<compile_context>
chip_gen: v5e
topology: v5e:2x2
jax: 0.10.0
libtpu: 0.0.40
codegen_flags: <defaults>
</compile_context>

<pallas_src>
import functools

import jax
import jax.numpy as jnp
from jax.experimental import pallas as pl
from jax.experimental.pallas import tpu as pltpu


def _round_up(v, m):
    return ((v + m - 1) // m) * m


# VMEM budgets (bytes).  Total is kept well inside v7x's 64 MiB physical
# VMEM; v5e/v6e (128 MiB) have ample headroom.
_TOTAL_VMEM_BUDGET = 48 * 1024 * 1024
_X_DBUF_BYTES = 32 * 1024 * 1024       # 2 x 16 MiB pipelined sample buffers


def _ipca_stats_kernel(prev_sum_ref, prev_gram_ref, x_ref, sum_ref, gram_ref,
                       *, n_samples, tile_rows):
    """Accumulate per-unit sufficient statistics for incremental PCA.

    prev_sum_ref : (1, 1, D)   running sum carried in from the last update
    prev_gram_ref: (1, D, D)   running Gram carried in from the last update
    x_ref        : (1, TN, D)  sample tile for unit `i` (grid axis 0), f32/bf16
    sum_ref      : (1, 1, D)   resident f32 accumulator (aliased to prev_sum)
    gram_ref     : (1, D, D)   resident f32 accumulator (aliased to prev_gram)
    """
    k = pl.program_id(1)

    @pl.when(k == 0)
    def _():
        # Seed the resident output accumulators with the carried-in running
        # statistics (in-place incremental update, no separate XLA add).
        sum_ref[...] = prev_sum_ref[...]
        gram_ref[...] = prev_gram_ref[...]

    x = x_ref[0]  # (TN, D), native dtype (f32 or bf16)

    # Ragged tail: mask rows past the true sample count.  Only emitted when
    # N % TN != 0 (static), so the common aligned case pays nothing.
    rem = n_samples % tile_rows
    if rem:
        valid_rows = n_samples - k * tile_rows  # >= tile_rows except last tile
        row = jax.lax.broadcasted_iota(jnp.int32, x.shape, 0)
        x = jnp.where(row < valid_rows, x, jnp.zeros_like(x))

    # Per-unit sum over the sample axis (XLU cross-sublane reduce), f32 acc.
    sum_ref[0] += x.astype(jnp.float32).sum(axis=0, keepdims=True)

    # Gram accumulation on the MXU: contract the sample axis (axis 0 of both
    # operands).  For f32 inputs we use an explicit bf16x3 decomposition
    # (Precision.HIGH semantics: ~16 mantissa bits, f32 accumulate) which is
    # 3 native bf16 MXU passes instead of HIGHEST's 6 emulated f32 passes.
    dot00 = functools.partial(
        jax.lax.dot_general,
        dimension_numbers=(((0,), (0,)), ((), ())),
        preferred_element_type=jnp.float32,
    )
    if x_ref.dtype == jnp.float32:
        hi = x.astype(jnp.bfloat16)
        lo = (x - hi.astype(jnp.float32)).astype(jnp.bfloat16)
        g = dot00(hi, hi) + dot00(hi, lo) + dot00(lo, hi)
    else:
        # bf16 (or narrower) inputs: single native MXU pass, f32 accumulate.
        g = dot00(x, x)
    gram_ref[0] += g


@functools.partial(jax.jit, donate_argnums=(1, 2))
def _ipca_update(x, prev_sum, prev_gram):
    """x: (U, N, D) f32/bf16; prev_sum: (U, 1, D) f32; prev_gram: (U, D, D) f32."""
    U, N, D = x.shape

    # --- trace-time tile sizing / VMEM accounting (shapes are static) ------
    Dp = _round_up(D, 128)              # lane-padded footprint in VMEM
    Ds = _round_up(D, 8)                # sublane-padded footprint in VMEM
    itemsize = x.dtype.itemsize
    sum_blk = 8 * Dp * 4
    gram_blk = Ds * Dp * 4
    fixed = 4 * sum_blk + 4 * gram_blk  # prev + out accumulator buffers
    per_row = Dp * itemsize             # one sample row in VMEM
    # TODO(synk): for very large D (gram buffers alone near the budget)
    #             re-derive this and consider pl.Buffered(1) on prev_*.
    x_budget = min(_X_DBUF_BYTES, max(_TOTAL_VMEM_BUDGET - fixed, 16 * per_row))
    tn = max(8, (x_budget // (2 * per_row)) // 8 * 8)
    tn = min(tn, _round_up(N, 8))
    kt = pl.cdiv(N, tn)
    vmem_limit = max(fixed + 2 * tn * per_row + (2 << 20), 16 << 20)

    kernel = functools.partial(_ipca_stats_kernel, n_samples=N, tile_rows=tn)

    new_sum, new_gram = pl.pallas_call(
        kernel,
        out_shape=(
            jax.ShapeDtypeStruct((U, 1, D), jnp.float32),
            jax.ShapeDtypeStruct((U, D, D), jnp.float32),
        ),
        grid_spec=pltpu.PrefetchScalarGridSpec(
            num_scalar_prefetch=0,
            grid=(U, kt),
            in_specs=[
                pl.BlockSpec((1, 1, D), lambda i, k: (i, 0, 0)),
                pl.BlockSpec((1, D, D), lambda i, k: (i, 0, 0)),
                pl.BlockSpec((1, tn, D), lambda i, k: (i, k, 0)),
            ],
            out_specs=(
                pl.BlockSpec((1, 1, D), lambda i, k: (i, 0, 0)),
                pl.BlockSpec((1, D, D), lambda i, k: (i, 0, 0)),
            ),
        ),
        # In-place accumulation: prev_sum -> sum, prev_gram -> gram.
        input_output_aliases={0: 0, 1: 1},
        compiler_params=pltpu.CompilerParams(
            dimension_semantics=("parallel", "arbitrary"),
            vmem_limit_bytes=int(vmem_limit),
        ),
    )(prev_sum, prev_gram, x)
    return new_sum, new_gram


class IncrementalPCAState:
    """Minimal JAX-side IncrementalPCA state (per unit-type)."""

    def __init__(self, k=None):
        self.k = k
        self.count = 0
        self.d = None
        self.sum = None    # (U, 1, D)  running sum, f32
        self.gram = None   # (U, D, D)  running Gram, f32

    def update(self, x_und):
        """x_und: (U, N, D) -- the permuted encoding from the torch forward."""
        x = jnp.asarray(x_und)
        # Stream native f32/bf16; never up-cast bf16 to f32 in HBM.
        if x.dtype not in (jnp.float32, jnp.bfloat16):
            x = x.astype(jnp.float32)
        U, N, D = x.shape

        if self.sum is None:
            self.d = D
            self.sum = jnp.zeros((U, 1, D), jnp.float32)
            self.gram = jnp.zeros((U, D, D), jnp.float32)

        self.sum, self.gram = _ipca_update(x, self.sum, self.gram)
        self.count = self.count + N
        return self

    def components(self):
        # Glue: mean / covariance / eigendecomposition -- runs once at the
        # end of tracing, not in the per-forward hot path.
        # TODO(synk): eigh has no Pallas equivalent; stays in plain JAX.
        mean = self.sum / self.count                      # (U, 1, D)
        cov = self.gram / self.count - jnp.einsum("uod,uoe->ude", mean, mean)
        evals, evecs = jnp.linalg.eigh(cov)
        if self.k is not None:
            evecs = evecs[..., -self.k:]
            evals = evals[..., -self.k:]
        return mean[:, 0, :], evals, evecs


class SerializePCAOp:
    """JAX/Pallas re-implementation of the torch SerializePCAOp forward.

    Filesystem / torch.save concerns of the original module (target_dir,
    exit()) are out of scope; the forward-pass math (reshape + permute +
    IncrementalPCA.update per unit-type) is preserved.
    """

    def __init__(self, k=None):
        if k is not None and k <= 0:
            raise ValueError("k must be a positive integer value or None")
        self.k = k
        self.unit_type2ipca = None
        self.initialized = False

    def _init(self, unit_type2encoding):
        self.unit_type2ipca = {
            unit_type: IncrementalPCAState(k=self.k)
            for unit_type in unit_type2encoding
        }
        self.initialized = True

    def __call__(self, unit_type2encodings):
        if not self.initialized:
            self._init(unit_type2encodings)
        for unit_type, unit_ipca in self.unit_type2ipca.items():
            encoding = unit_type2encodings[unit_type]
            n, *t, u, d = encoding.shape
            t = t[0] if t else 1
            encoding = jnp.reshape(encoding, (n * t, u, d))   # (n*t, u, d)
            encoding = jnp.transpose(encoding, (1, 0, 2))     # (u, n*t, d)
            unit_ipca.update(encoding)
        return self.unit_type2ipca


if __name__ == "__main__":
    key = jax.random.PRNGKey(0)
    k1, k2, k3 = jax.random.split(key, 3)

    # small shapes: batch n=2, seq t=8, units u=4, hidden d=32
    enc_a = jax.random.normal(k1, (2, 8, 4, 32), dtype=jnp.float32)
    # a second unit-type without the time axis: (n, u, d) -- ragged N=2,
    # exercises the in-kernel tail masking path
    enc_b = jax.random.normal(k2, (2, 4, 32), dtype=jnp.float32)

    op = SerializePCAOp(k=3)
    # two forward passes: exercises both the init path and the in-place
    # (aliased / donated) incremental-accumulation path
    op({"unit_a": enc_a, "unit_b": enc_b})
    states = op({"unit_a": enc_a, "unit_b": enc_b})

    for st in states.values():
        jax.block_until_ready(st.sum)
        jax.block_until_ready(st.gram)

    # correctness check against a plain-JAX reference (two updates -> 2x)
    x = jnp.transpose(enc_a.reshape(16, 4, 32), (1, 0, 2))
    ref_sum = 2.0 * x.sum(axis=1)
    ref_gram = 2.0 * jnp.einsum(
        "und,une->ude", x, x, precision=jax.lax.Precision.HIGHEST
    )
    assert states["unit_a"].count == 32
    assert jnp.allclose(states["unit_a"].sum[:, 0, :], ref_sum, atol=1e-4), "sum mismatch"
    assert jnp.allclose(states["unit_a"].gram, ref_gram, rtol=1e-3, atol=1e-3), "gram mismatch"

    xb = jnp.transpose(enc_b.reshape(2, 4, 32), (1, 0, 2))
    ref_sum_b = 2.0 * xb.sum(axis=1)
    ref_gram_b = 2.0 * jnp.einsum(
        "und,une->ude", xb, xb, precision=jax.lax.Precision.HIGHEST
    )
    assert jnp.allclose(states["unit_b"].sum[:, 0, :], ref_sum_b, atol=1e-4), "ragged sum mismatch"
    assert jnp.allclose(states["unit_b"].gram, ref_gram_b, rtol=1e-3, atol=1e-3), "ragged gram mismatch"

    # bf16 streaming path (no f32 up-cast in HBM, single native MXU pass)
    enc_c = jax.random.normal(k3, (2, 8, 4, 32), dtype=jnp.bfloat16)
    op_bf16 = SerializePCAOp()
    st_c = op_bf16({"unit_c": enc_c})["unit_c"]
    jax.block_until_ready(st_c.gram)
    xc = jnp.transpose(enc_c.astype(jnp.float32).reshape(16, 4, 32), (1, 0, 2))
    ref_sum_c = xc.sum(axis=1)
    ref_gram_c = jnp.einsum(
        "und,une->ude", xc, xc, precision=jax.lax.Precision.HIGHEST
    )
    assert jnp.allclose(st_c.sum[:, 0, :], ref_sum_c, atol=1e-3), "bf16 sum mismatch"
    assert jnp.allclose(st_c.gram, ref_gram_c, rtol=1e-3, atol=1e-3), "bf16 gram mismatch"

    # exercise the (non-hot-path) eigendecomposition glue once
    mean, evals, evecs = states["unit_a"].components()
    jax.block_until_ready(evecs)

    print("KERNEL_OK")
</pallas_src>

<mosaic_0001>
module attributes {stable_mosaic.version = 11 : i64} {
  func.func @_ipca_stats_kernel(%arg0: i32, %arg1: i32, %arg2: memref<1x1x32xf32, #tpu.memory_space<vmem>>, %arg3: memref<1x32x32xf32, #tpu.memory_space<vmem>>, %arg4: memref<1x16x32xf32, #tpu.memory_space<vmem>>, %arg5: memref<1x1x32xf32, #tpu.memory_space<vmem>>, %arg6: memref<1x32x32xf32, #tpu.memory_space<vmem>>) attributes {dimension_semantics = [#tpu.dimension_semantics<parallel>, #tpu.dimension_semantics<arbitrary>], iteration_bounds = array<i64: 4, 1>, scalar_prefetch = 0 : i64, scratch_operands = 0 : i64, tpu.core_type = #tpu.core_type<tc>, window_params = [{transform_indices = @transform_0, window_bounds = array<i64: 1, 1, 32>}, {transform_indices = @transform_1, window_bounds = array<i64: 1, 32, 32>}, {transform_indices = @transform_2, window_bounds = array<i64: 1, 16, 32>}, {transform_indices = @transform_3, window_bounds = array<i64: 1, 1, 32>}, {transform_indices = @transform_4, window_bounds = array<i64: 1, 32, 32>}]} {
    %c0_i32 = arith.constant 0 : i32
    %0 = arith.cmpi eq, %arg1, %c0_i32 : i32
    %1 = arith.extui %0 : i1 to i32
    %c0_i32_0 = arith.constant 0 : i32
    %2 = arith.cmpi ne, %1, %c0_i32_0 : i32
    scf.if %2 {
      %c0_18 = arith.constant 0 : index
      %c0_19 = arith.constant 0 : index
      %c0_20 = arith.constant 0 : index
      %28 = vector.load %arg2[%c0_18, %c0_19, %c0_20] : memref<1x1x32xf32, #tpu.memory_space<vmem>>, vector<1x1x32xf32>
      %c0_21 = arith.constant 0 : index
      %c0_22 = arith.constant 0 : index
      %c0_23 = arith.constant 0 : index
      %29 = vector.load %arg5[%c0_21, %c0_22, %c0_23] : memref<1x1x32xf32, #tpu.memory_space<vmem>>, vector<1x1x32xf32>
      tpu.vector_store %arg5[%c0_21, %c0_22, %c0_23], %28 {strides = array<i32>} : memref<1x1x32xf32, #tpu.memory_space<vmem>>, vector<1x1x32xf32>,
      %c0_24 = arith.constant 0 : index
      %c0_25 = arith.constant 0 : index
      %c0_26 = arith.constant 0 : index
      %30 = vector.load %arg3[%c0_24, %c0_25, %c0_26] : memref<1x32x32xf32, #tpu.memory_space<vmem>>, vector<1x32x32xf32>
      %c0_27 = arith.constant 0 : index
      %c0_28 = arith.constant 0 : index
      %c0_29 = arith.constant 0 : index
      %31 = vector.load %arg6[%c0_27, %c0_28, %c0_29] : memref<1x32x32xf32, #tpu.memory_space<vmem>>, vector<1x32x32xf32>
      tpu.vector_store %arg6[%c0_27, %c0_28, %c0_29], %30 {strides = array<i32>} : memref<1x32x32xf32, #tpu.memory_space<vmem>>, vector<1x32x32xf32>,
    } else {
    }
    %c0 = arith.constant 0 : index
    %c0_1 = arith.constant 0 : index
    %c0_2 = arith.constant 0 : index
    %3 = vector.load %arg4[%c0, %c0_1, %c0_2] : memref<1x16x32xf32, #tpu.memory_space<vmem>>, vector<1x16x32xf32>
    %4 = vector.shape_cast %3 : vector<1x16x32xf32> to vector<16x32xf32>
    %c0_3 = arith.constant 0 : index
    %c0_4 = arith.constant 0 : index
    %c0_5 = arith.constant 0 : index
    %5 = vector.load %arg5[%c0_3, %c0_4, %c0_5] : memref<1x1x32xf32, #tpu.memory_space<vmem>>, vector<1x1x32xf32>
    %6 = vector.shape_cast %5 : vector<1x1x32xf32> to vector<1x32xf32>
    %cst = arith.constant dense<0.000000e+00> : vector<32xf32>
    %7 = vector.multi_reduction <add>, %4, %cst [0] : vector<16x32xf32> to vector<32xf32>
    %8 = vector.shape_cast %7 : vector<32xf32> to vector<1x32xf32>
    %9 = arith.addf %6, %8 : vector<1x32xf32>
    %c0_6 = arith.constant 0 : index
    %c0_7 = arith.constant 0 : index
    %c0_8 = arith.constant 0 : index
    %10 = vector.load %arg5[%c0_6, %c0_7, %c0_8] : memref<1x1x32xf32, #tpu.memory_space<vmem>>, vector<1x1x32xf32>
    %11 = vector.shape_cast %10 : vector<1x1x32xf32> to vector<1x32xf32>
    %12 = vector.shape_cast %9 : vector<1x32xf32> to vector<1x1x32xf32>
    tpu.vector_store %arg5[%c0_6, %c0_7, %c0_8], %12 {strides = array<i32>} : memref<1x1x32xf32, #tpu.memory_space<vmem>>, vector<1x1x32xf32>,
    %13 = arith.truncf %4 : vector<16x32xf32> to vector<16x32xbf16>
    %14 = arith.extf %13 : vector<16x32xbf16> to vector<16x32xf32>
    %15 = arith.subf %4, %14 : vector<16x32xf32>
    %16 = arith.truncf %15 : vector<16x32xf32> to vector<16x32xbf16>
    %cst_9 = arith.constant dense<0.000000e+00> : vector<32x32xf32>
    %17 = tpu.matmul %13, %13, %cst_9 {dimension_numbers = #tpu.dot_dimension_numbers<[0], [0], [1], [1], [0, 1, 1, 1], [], []>} : vector<16x32xbf16>, vector<16x32xbf16>, vector<32x32xf32> -> vector<32x32xf32>
    %cst_10 = arith.constant dense<0.000000e+00> : vector<32x32xf32>
    %18 = tpu.matmul %13, %16, %cst_10 {dimension_numbers = #tpu.dot_dimension_numbers<[0], [0], [1], [1], [0, 1, 1, 1], [], []>} : vector<16x32xbf16>, vector<16x32xbf16>, vector<32x32xf32> -> vector<32x32xf32>
    %19 = arith.addf %17, %18 : vector<32x32xf32>
    %cst_11 = arith.constant dense<0.000000e+00> : vector<32x32xf32>
    %20 = tpu.matmul %16, %13, %cst_11 {dimension_numbers = #tpu.dot_dimension_numbers<[0], [0], [1], [1], [0, 1, 1, 1], [], []>} : vector<16x32xbf16>, vector<16x32xbf16>, vector<32x32xf32> -> vector<32x32xf32>
    %21 = arith.addf %19, %20 : vector<32x32xf32>
    %c0_12 = arith.constant 0 : index
    %c0_13 = arith.constant 0 : index
    %c0_14 = arith.constant 0 : index
    %22 = vector.load %arg6[%c0_12, %c0_13, %c0_14] : memref<1x32x32xf32, #tpu.memory_space<vmem>>, vector<1x32x32xf32>
    %23 = vector.shape_cast %22 : vector<1x32x32xf32> to vector<32x32xf32>
    %24 = arith.addf %23, %21 : vector<32x32xf32>
    %c0_15 = arith.constant 0 : index
    %c0_16 = arith.constant 0 : index
    %c0_17 = arith.constant 0 : index
    %25 = vector.load %arg6[%c0_15, %c0_16, %c0_17] : memref<1x32x32xf32, #tpu.memory_space<vmem>>, vector<1x32x32xf32>
    %26 = vector.shape_cast %25 : vector<1x32x32xf32> to vector<32x32xf32>
    %27 = vector.shape_cast %24 : vector<32x32xf32> to vector<1x32x32xf32>
    tpu.vector_store %arg6[%c0_15, %c0_16, %c0_17], %27 {strides = array<i32>} : memref<1x32x32xf32, #tpu.memory_space<vmem>>, vector<1x32x32xf32>,
    return
  }
  func.func @transform_0(%arg0: i32, %arg1: i32) -> (i32, i32, i32) {
    %c0_i32 = arith.constant 0 : i32
    %c0_i32_0 = arith.constant 0 : i32
    %c0_i32_1 = arith.constant 0 : i32
    return %arg0, %c0_i32, %c0_i32_0 : i32, i32, i32
  }
  func.func @transform_1(%arg0: i32, %arg1: i32) -> (i32, i32, i32) {
    %c0_i32 = arith.constant 0 : i32
    %c0_i32_0 = arith.constant 0 : i32
    %c0_i32_1 = arith.constant 0 : i32
    return %arg0, %c0_i32, %c0_i32_0 : i32, i32, i32
  }
  func.func @transform_2(%arg0: i32, %arg1: i32) -> (i32, i32, i32) {
    %c0_i32 = arith.constant 0 : i32
    %c0_i32_0 = arith.constant 0 : i32
    return %arg0, %arg1, %c0_i32 : i32, i32, i32
  }
  func.func @transform_3(%arg0: i32, %arg1: i32) -> (i32, i32, i32) {
    %c0_i32 = arith.constant 0 : i32
    %c0_i32_0 = arith.constant 0 : i32
    %c0_i32_1 = arith.constant 0 : i32
    return %arg0, %c0_i32, %c0_i32_0 : i32, i32, i32
  }
  func.func @transform_4(%arg0: i32, %arg1: i32) -> (i32, i32, i32) {
    %c0_i32 = arith.constant 0 : i32
    %c0_i32_0 = arith.constant 0 : i32
    %c0_i32_1 = arith.constant 0 : i32
    return %arg0, %c0_i32, %c0_i32_0 : i32, i32, i32
  }
}

</mosaic_0001>

<bundles_post_ra>
// kernel: _ipca_update.1
= control target key start
LH: loop header
LB: loop body
LE: loop exit
PB: predicated region body
PF: predicated region fallthrough
CT: control target
= control target key end

     0   :  { %s1237_s0 = inlined_call_operand.hbm [shape: f32[4,1,32], index: 0, kind: input, shape index: {}, may-alias: {0,3}]   ;;  %s1238_s1 = inlined_call_operand.hbm [shape: f32[4,32,32], index: 1, kind: input, shape index: {}, may-alias: {1,4}]   ;;  %s1239_s2 = inlined_call_operand.hbm [shape: f32[4,16,32], index: 2, kind: input, shape index: {}]   ;;  %s1240_s3 = inlined_call_operand.hbm [shape: f32[4,1,32], index: 3, kind: output, shape index: {0}, may-alias: {0,3}]   ;;  %s1241_s4 = inlined_call_operand.hbm [shape: f32[4,32,32], index: 4, kind: output, shape index: {1}, may-alias: {1,4}]  }
   0x1   :  { %1248 = sst [smem:[#allocation21_spill]] %s1238_s1 }
   0x2   :  { %10 = vsyncpa [#allocation3], 0 }
   0x3   :  { %12 = vsyncpa [#allocation3 + $0x1], 0 }
   0x4   :  { %13 = vsyncpa [#allocation6], 0 }
   0x5   :  { %15 = vsyncpa [#allocation6 + $0x1], 0 }
   0x6   :  { %16 = vsyncpa [#allocation4], 0 }
   0x7   :  { %18 = vsyncpa [#allocation4 + $0x1], 0 }
   0x8   :  { %19 = vsyncpa [#allocation10], 0 }
   0x9   :  { %21 = vsyncpa [#allocation10 + $0x1], 0  ;;  %s1022_s15 = smov 0   ;;  %s1024_s16 = smov 0  }
   0xa   :  { %s1026_s17 = smov 0   ;;  %s1028_s18 = smov 0  }
   0xb   :  { %s1030_s19 = smov 0   ;;  %s1032_s20 = smov 0  }
   0xc LB: > { %1249 = sst [smem:[#allocation15_spill]] %s971_s15  ;;  %s1053_s21 = sadd.s32 4294967295, %s991_s20   ;;  %s991_s20 = sphi %s1032_s20, %s27_s20   ;;  %s987_s19 = sphi %s1030_s19, %s1271_s19   ;;  %s983_s18 = sphi %s1028_s18, %s1270_s18   ;;  %s979_s17 = sphi %s1026_s17, %s1266_s17   ;;  %s975_s16 = sphi %s1024_s16, %s1269_s16   ;;  %s971_s15 = sphi %s1022_s15, %s1268_s15  }
   0xd   : > { %1250 = sst [smem:[#allocation16_spill]] %s979_s17  ;;  %s668_s22 = sadd.s32 4294967294, %s991_s20  }
   0xe   : > { %1251 = sst [smem:[#allocation17_spill]] %s991_s20  ;;  %s39_s23 = sadd.s32 1, %s987_s19 }
   0xf   : > { %s46_s24 = sadd.s32 1, %s979_s17  ;;  %p41_p0 = scmp.ge.s32.totalorder %s39_s23, 4 }
  0x10   : > { %p53_p1 = scmp.ne.s32.totalorder %s979_s17, %s975_s16  ;;  %p54_p2 = scmp.eq.s32.totalorder %s991_s20, 0 }
  0x11   : > { %p59_p3 = scmp.ne.s32.totalorder %s975_s16, %s971_s15  ;;  %s1273_s23 = smov (%p41_p0, %s39_s23), 0 }
  0x12   : > { %1252 = sst [smem:[#allocation18_spill]] %s1273_s23  ;;  %p1065_p4 = por %p54_p2, %p53_p1 }
  0x13   : > { %p60_p5 = scmp.eq.s32.totalorder %s1053_s21, 0  ;;  %s43_s26 = ssub.s32 %s987_s19, %s1273_s23 }
  0x14   : > { %p137_p6 = scmp.eq.s32.totalorder %s1053_s21, 3  ;;  %p44_p7 = scmp.eq.s32.totalorder %s43_s26, 0 }
  0x15   : > { %p1073_p8 = por %p60_p5, %p59_p3  ;;  %p143_p10 = scmp.eq.s32.totalorder %s668_s22, 3 }
  0x16   : > { %p1077_p9 = por %p137_p6, %p53_p1  ;;  %p723_p12 = scmp.lt.s32.totalorder %s991_s20, 4 }
  0x17   : > { %s1082_s29 = scalar_select %p44_p7, %s979_s17, %s46_s24  }
  0x18   : > { %p1084_p11 = por %p143_p10, %p59_p3  ;;  %s1090_s5 = sand.u32 1, %s979_s17  }
  0x19   : > { %1256 = sst [smem:[#allocation19_spill]] %s1082_s29  ;;  %s206_s6 = sand.u32 1, %s991_s20  }
  0x1a   : > { %s1257_s30 = scalar_select %p1084_p11, 1, 0 }
  0x1b   : > { %s671_s7 = sshll.u32 %s1090_s5, 5  ;;  %p1096_p13 = pnand %p723_p12, %p1065_p4 }
  0x1c   : > { %1258 = sst [smem:[#allocation20_spill]] %s1257_s30  ;;  %s692_s9 = sshll.u32 %s987_s19, 5 }
  0x1d   : > { %s1260_s1 = sld [smem:[#allocation21_spill]]  ;;  %s210_s14 = scalar_lea.vmem [#allocation5], %s671_s7 }
  0x1e   : > { %s218_s22 = sshll.u32 %s210_s14, 4  ;;  %s207_s24 = scalar_lea.sflag [#allocation6], %s206_s6  ;;  %s219_s22 = int_to_ptr.vmem [resolvable:$true] %s218_s22 }
  0x1f   : > { %s993_s25 = smov 128   ;;  %s994_s26 = smov 8  }
  0x20   : > { %p677_p0 = scmp.ge.s32.totalorder %s991_s20, 1  ;;  %p250_p1 = scmp.lt.s32.totalorder %s991_s20, 5 }
  0x21   : > { %s195_s11 = scalar_lea.hbm %s1237_s0, %s987_s19  ;;  %s192_s14 = scalar_lea.vmem [#allocation2], %s1090_s5 }
  0x22   : > { %p1108_p2 = pnand %p677_p0, %p250_p1  ;;  %s190_s6 = scalar_lea.sflag [#allocation3], %s1090_s5 }
  0x23   : > { %s215_s12 = scalar_lea.hbm %s1260_s1, %s692_s9  ;;  %s199_s1 = sshll.u32 %s192_s14, 4  ;;  %s200_s1 = int_to_ptr.vmem [resolvable:$true] %s199_s1 }
  0x24   : > { %s216_s13 = sshll.u32 %s215_s12, 4  ;;  %s197_s12 = sshll.u32 %s195_s11, 4  ;;  %s217_s13 = int_to_ptr.hbm [resolvable:$true] %s216_s13  ;;  %s198_s12 = int_to_ptr.hbm [resolvable:$true] %s197_s12 }
  0x25   : > { %712 = dma.hbm_to_vmem [thread:$0]  (!%p1096_p13), %s217_s13, 512, %s219_s22, %s207_s24, %s993_s25, %s993_s25, %s994_s26  }
  0x26   : > { %709 = dma.hbm_to_vmem [thread:$0]  (!%p1096_p13), %s198_s12, 16, %s200_s1, %s190_s6  }
  0x27   : > { %s674_s13 = sshll.u32 %s1090_s5, 4  ;;  %s693_s22 = sshll.u32 %s987_s19, 4 }
  0x28   : > { %s239_s17 = scalar_lea.hbm %s1239_s2, %s693_s22  ;;  %s232_s15 = scalar_lea.vmem [#allocation7], %s674_s13 }
  0x29   : > { %s240_s30 = sshll.u32 %s239_s17, 4  ;;  %s242_s20 = sshll.u32 %s232_s15, 4  ;;  %s241_s30 = int_to_ptr.hbm [resolvable:$true] %s240_s30  ;;  %s243_s20 = int_to_ptr.vmem [resolvable:$true] %s242_s20 }
  0x2a   : > { %715 = dma.hbm_to_vmem [thread:$0]  (!%p1096_p13), %s241_s30, 256, %s243_s20, %s207_s24, %s993_s25, %s993_s25, %s994_s26  }
  0x2b   : > { %254 = sbr.rel (%p1108_p2) target bundleno = 410 (0x19a), region = 32  ;;  %s1130_s9 = sand.u32 (!%p1108_p2), 1, %s975_s16  }
  0x2c   : > { %s257_s1 = scalar_lea.sflag (!%p1108_p2), [#allocation3], %s1130_s9  ;;  %s259_s5 = scalar_lea.vmem (!%p1108_p2), [#allocation2], %s1130_s9 }
  0x30   : > { %954 = dma.done.wait (%p1073_p8), %s257_s1, 16  }
  0x31   : > { %956 = vsyncadd (%p1073_p8), %s257_s1, 4294967280  ;;  %s265_s15 = sand.u32 1, %s1053_s21   ;;  %s678_s17 = sshll.u32 %s1130_s9, 5 }
  0x32   : > { %s266_s20 = scalar_lea.sflag [#allocation6], %s265_s15  ;;  %s1142_s23 = scalar_lea.vmem [#allocation5], %s678_s17 }
  0x33   : > { %958 = dma.done.wait (%p1073_p8), %s266_s20, 768  }
  0x34   : > { %960 = vsyncadd (%p1073_p8), %s266_s20, 4294966528  ;;  %s679_s29 = sshll.u32 %s1130_s9, 4  ;;  %vm331_vm0 = vcmask 261120   ;;  %vm381_vm1 = vcmask 130048   ;;  %v327_v19 = vld [vmem:[%s1142_s23] sm:$0xff]  ;;  %s1154_s21 = scalar_lea.vmem [#allocation9], %s678_s17 }
  0x35   : > { %s279_s30 = scalar_lea.vmem [#allocation7], %s679_s29  ;;  %332 = vst.msk [vmem:[%s1154_s21] sm:$0xff] %vm331_vm0, %v327_v19  ;;  %v328_v20 = vld [vmem:[%s1142_s23 + $0x8] sm:$0xff]  ;;  %v329_v22 = vld [vmem:[%s1142_s23 + $0x10] sm:$0xff]  ;;  %v330_v26 = vld [vmem:[%s1142_s23 + $0x18] sm:$0xff]  ;;  %vm325_vm2 = vcmask 253952   ;;  %s497_s25 = scalar_lea.hbm %s1240_s3, %s983_s18 }
  0x36   : > { %v336_v0 = vld [vmem:[%s279_s30] sm:$0xff]  ;;  %v337_v1 = vld [vmem:[%s279_s30 + $0x8] sm:$0xff]  ;;  %333 = vst.msk [vmem:[%s1154_s21 + $0x8] sm:$0xff] %vm331_vm0, %v328_v20  ;;  %s310_s27 = scalar_lea.vmem [#allocation8], %s1130_s9  ;;  %s501_s10 = sshll.u32 %s497_s25, 4  ;;  %s502_s10 = int_to_ptr.hbm [resolvable:$true] %s501_s10 }
  0x37   : > { %v341_v2 = vsel %vm331_vm0, %v337_v1, 0.0  ;;  %v352_v3 = vpack.c.bf16 %v336_v0, %v336_v0  ;;  %v353_v4 = vpack.c.bf16 %v337_v1, %v337_v1  ;;  %v340_v5 = vsel %vm331_vm0, %v336_v0, 0.0  ;;  %334 = vst.msk [vmem:[%s1154_s21 + $0x10] sm:$0xff] %vm331_vm0, %v329_v22  ;;  %v324_v27 = vld [vmem:[%s259_s5] sm:$0x1]  ;;  %s499_s26 = sshll.u32 %s310_s27, 4  ;;  %s500_s26 = int_to_ptr.vmem [resolvable:$true] %s499_s26 }
  0x38   : > { %v342_v6 = vadd.f32 %v341_v2, %v340_v5  ;;  %335 = vst.msk [vmem:[%s1154_s21 + $0x18] sm:$0xff] %vm331_vm0, %v330_v26  ;;  %s484_s7 = scalar_lea.sflag [#allocation4], %s1130_s9  ;;  %s887_s11 = sshra.s32 %s502_s10, 4  ;;  %s888_s11 = int_to_ptr.hbm [resolvable:$true] %s887_s11 }
  0x39   : > { %v354_v7 = vunpack.c.l.bf16 %v352_v3  ;;  %v355_v8 = vunpack.c.l.bf16 %v353_v4  ;;  %v361_v9 = vunpack.c.l.b16 %v352_v3  ;;  %v362_v10 = vunpack.c.l.b16 %v353_v4  ;;  %326 = vst.msk [vmem:[%s310_s27] sm:$0x1] %vm325_vm2, %v324_v27  ;;  %s889_s12 = scalar_lea.hbm %s888_s11, 1  ;;  %s893_s13 = scalar_lea.hbm %s1240_s3, 4 }
  0x3a   : > { %v343_v21 = vrot.slane %v342_v6, 4  ;;  %p890_p3 = scmp.ne.s32.totalorder %s888_s11, %s889_s12  ;;  %p894_p6 = scmp.lt.s32.totalorder %s888_s11, %s1240_s3 }
  0x3b   : > { %v356_v11 = vsub.f32 %v336_v0, %v354_v7  ;;  %v357_v12 = vsub.f32 %v337_v1, %v355_v8  ;;  %v363_v13 = vpack.c.b16 %v362_v10, %v361_v9  ;;  %p895_p7 = scmp.lt.s32.totalorder %s893_s13, %s889_s12 }
  0x3c   : > { %v344_v23 = vadd.f32 %v343_v21, %v342_v6  ;;  %v471_v34 = vld [vmem:[%s1154_s21] sm:$0xff]  ;;  %p891_p4 = pnand %p890_p3, %p1077_p9 }
  0x3d   : > { %v358_v14 = vpack.c.bf16 %v357_v12, %v356_v11  ;;  %455 = vmatpush.bf16.msra.mxu2 %v363_v13  ;;  %414 = vmatpush.bf16.msra.mxu1 %v363_v13  ;;  %p896_p8 = por %p895_p7, %p894_p6 }
  0x3e   : > { %v345_v24 = vrot.slane %v344_v23, 2  ;;  %p892_p5 = pneg %p891_p4 }
  0x3f   : > { %778 = vxpose.binary.xlu0.c.b16.start.end [1/2] (short) (narrow) %v363_v13, %v358_v14, 32 }
  0x40   : > { %395 = vmatpush.bf16.msra.mxu0 %v358_v14  ;;  %695 = vmatpush.bf16.msra.mxu3 %v358_v14  ;;  %v346_v25 = vadd.f32 %v345_v24, %v344_v23  ;;  %v338_v36 = vld [vmem:[%s310_s27] sm:$0x1]  ;;  %p897_p10 = pnand %p896_p8, %p892_p5 }
  0x42   : > { %v347_v28 = vrot.slane %v346_v25, 1 }
  0x44   : > { %v348_v33 = vadd.f32 %v347_v28, %v346_v25 }
  0x46   : > { %v349_v37 = vadd.f32 %v348_v33, %v338_v36 }
  0x48   : > { %351 = vst.msk [vmem:[%s310_s27] sm:$0x1] %vm325_vm2, %v349_v37 }
  0xeb   : > { %v779_v15 = vpop.trf.xlu0 }
  0xec   : > { %685 = vmatmul.msk.bf16.vlgmr.msra.gmra.mxu2 %vm381_vm1, %v779_v15 }
  0xf3   : > { %v780_v16 = vpop.trf.xlu0 }
  0xf4   : > { %681 = vmatmul.msk.bf16.vlgmr.msra.gmra.mxu0 %vm381_vm1, %v780_v16  ;;  %683 = vmatmul.msk.bf16.vlgmr.msra.gmra.mxu1 %vm381_vm1, %v780_v16 }
  0xfb   : > { %v781_v17 = vpop.trf.xlu0 }
  0xfc   : > { %686 = vmatmul.msk.bf16.gmra.mxu2 %vm381_vm1, %v781_v17 }
 0x103   : > { %v782_v18 = vpop.trf.xlu0 }
 0x104   : > { %682 = vmatmul.msk.bf16.vlgmr.msra.gmra.mxu3 %vm381_vm1, %v782_v18  ;;  %684 = vmatmul.msk.bf16.gmra.mxu1 %vm381_vm1, %v782_v18 }
 0x16f   : > { %v457_v29 = vpop.f32.mrf.mxu2 }
 0x171   : > { %v397_v30 = vpop.f32.mrf.mxu0  ;;  %v416_v31 = vpop.f32.mrf.mxu1 }
 0x172   : > { %v417_v32 = vadd.f32 %v416_v31, %v397_v30 }
 0x174   : > { %v467_v35 = vadd.f32 %v457_v29, %v417_v32 }
 0x176   : > { %v475_v38 = vadd.f32 %v471_v34, %v467_v35 }
 0x178   : > { %479 = vst.msk [vmem:[%s1154_s21] sm:$0xff] %vm331_vm0, %v475_v38 }
 0x179   : > { %900 = shalt.err (!%p897_p10)
}
 0x17a   : > { %702 = dma.vmem_to_hbm [thread:$0]  (%p1077_p9), %s500_s26, 16, %s502_s10, %s484_s7   ;;  %v399_v39 = vpop.f32.mrf.mxu0  ;;  %v418_v40 = vpop.f32.mrf.mxu1  ;;  %v472_v43 = vld [vmem:[%s1154_s21 + $0x8] sm:$0xff]  ;;  %v473_v50 = vld [vmem:[%s1154_s21 + $0x10] sm:$0xff]  ;;  %v474_v57 = vld [vmem:[%s1154_s21 + $0x18] sm:$0xff] }
 0x17b   : > { %v419_v41 = vadd.f32 %v418_v40, %v399_v39  ;;  %v459_v42 = vpop.f32.mrf.mxu2  ;;  %s694_s5 = sshll.u32 %s983_s18, 5  ;;  %s513_s23 = sshll.u32 %s1154_s21, 4  ;;  %s514_s23 = int_to_ptr.vmem [resolvable:$true] %s513_s23 }
 0x17c   : > { %s512_s20 = scalar_lea.hbm %s1241_s4, %s694_s5  ;;  %s488_s18 = scalar_lea.sflag [#allocation10], %s1130_s9 }
 0x17d   : > { %v468_v44 = vadd.f32 %v459_v42, %v419_v41  ;;  %s515_s29 = sshll.u32 %s512_s20, 4  ;;  %s921_s25 = scalar_lea.hbm %s1241_s4, 128  ;;  %s516_s29 = int_to_ptr.hbm [resolvable:$true] %s515_s29 }
 0x17e   : > { %s915_s30 = sshra.s32 %s516_s29, 4  ;;  %s916_s30 = int_to_ptr.hbm [resolvable:$true] %s915_s30 }
 0x17f   : > { %v476_v45 = vadd.f32 %v472_v43, %v468_v44  ;;  %s917_s27 = scalar_lea.hbm %s916_s30, 32  ;;  %p922_p1 = scmp.lt.s32.totalorder %s916_s30, %s1241_s4 }
 0x180   : > { %p918_p12 = scmp.ne.s32.totalorder %s916_s30, %s917_s27  ;;  %p923_p2 = scmp.lt.s32.totalorder %s921_s25, %s917_s27 }
 0x181   : > { %480 = vst.msk [vmem:[%s1154_s21 + $0x8] sm:$0xff] %vm331_vm0, %v476_v45 }
 0x182   : > { %v421_v46 = vpop.f32.mrf.mxu1  ;;  %p919_p13 = pnand %p918_p12, %p1077_p9  ;;  %p924_p3 = por %p923_p2, %p922_p1 }
 0x183   : > { %v462_v47 = vpop.f32.mrf.mxu2 }
 0x184   : > { %p920_p0 = pneg %p919_p13 }
 0x186   : > { %p925_p4 = pnand %p924_p3, %p920_p0 }
 0x187   : > { %v402_v48 = vpop.f32.mrf.mxu3 }
 0x188   : > { %v422_v49 = vadd.f32 %v421_v46, %v402_v48 }
 0x18a   : > { %v469_v51 = vadd.f32 %v462_v47, %v422_v49  ;;  %v423_v53 = vpop.f32.mrf.mxu1 }
 0x18b   : > { %v464_v56 = vpop.f32.mrf.mxu2 }
 0x18c   : > { %v477_v52 = vadd.f32 %v473_v50, %v469_v51 }
 0x18e   : > { %481 = vst.msk [vmem:[%s1154_s21 + $0x10] sm:$0xff] %vm331_vm0, %v477_v52 }
 0x18f   : > { %v404_v54 = vpop.f32.mrf.mxu3 }
 0x190   : > { %v424_v55 = vadd.f32 %v423_v53, %v404_v54 }
 0x192   : > { %v470_v58 = vadd.f32 %v464_v56, %v424_v55 }
 0x194   : > { %v478_v59 = vadd.f32 %v474_v57, %v470_v58 }
 0x196   : > { %482 = vst.msk [vmem:[%s1154_s21 + $0x18] sm:$0xff] %vm331_vm0, %v478_v59 }
 0x197   : > { %928 = shalt.err (!%p925_p4)
}
 0x198   : > { %s995_s9 = smov 128   ;;  %s996_s21 = smov 8  }
 0x199   : > { %703 = dma.vmem_to_hbm [thread:$0]  (%p1077_p9), %s514_s23, 512, %s516_s29, %s488_s18, %s995_s9, %s995_s9, %s996_s21  }
 0x19a PF: > { %s1262_s7 = sld [smem:[#allocation17_spill]] }
 0x19b   : > { %s1263_s11 = sld [smem:[#allocation15_spill]] }
 0x1a0   : > { %p724_p5 = scmp.ge.s32.totalorder %s1262_s7, 2 }
 0x1a1   : > { %s530_s14 = sand.u32 1, %s1263_s11  }
 0x1a2   : > { %p717_p6 = pnand %p724_p5, %p1084_p11  ;;  %s531_s6 = scalar_lea.sflag [#allocation4], %s530_s14 }
 0x1a4   : > { %p718_p7 = pneg %p717_p6 }
 0x1a6   : > { %962 = dma.done.wait (%p718_p7), %s531_s6, 16  }
 0x1a7   : > { %964 = vsyncadd (%p718_p7), %s531_s6, 4294967280  ;;  %s540_s13 = scalar_lea.sflag [#allocation10], %s530_s14 }
 0x1a8   : > { %966 = dma.done.wait (%p718_p7), %s540_s13, 512  }
 0x1a9   : > { %968 = vsyncadd (%p718_p7), %s540_s13, 4294966784  ;;  %s27_s20 = sadd.s32 1, %s1262_s7   ;;  %s1265_s28 = sld [smem:[#allocation16_spill]] }
 0x1aa   : > { %p24_p8 = scmp.ge.s32.totalorder %s27_s20, 6   ;;  %s1266_s17 = sld [smem:[#allocation19_spill]] }
 0x1ab   : > { %s1267_s22 = sld [smem:[#allocation18_spill]]  ;;  %s1268_s15 = smov %s975_s16 }
 0x1ac   : > { %s1270_s18 = smov %s987_s19 }
 0x1ad   :  { %26 = sbr.rel (!%p24_p8) target bundleno = 12 (0xc), region = 122 }
 0x1af   : > { %s1269_s16 = smov %s1265_s28 }
 0x1b1   : > { %s1271_s19 = smov %s1267_s22 }
 0x1b2   :  { %546 = vsyncpa [#allocation3], 1 }
 0x1b3   :  { %548 = vsyncpa [#allocation3 + $0x1], 1 }
 0x1b4   :  { %549 = vsyncpa [#allocation6], 1 }
 0x1b5   :  { %551 = vsyncpa [#allocation6 + $0x1], 1 }
 0x1b6   :  { %552 = vsyncpa [#allocation4], 1 }
 0x1b7   :  { %554 = vsyncpa [#allocation4 + $0x1], 1 }
 0x1b8   :  { %555 = vsyncpa [#allocation10], 1 }
 0x1b9   :  { %557 = vsyncpa [#allocation10 + $0x1], 1 }

</bundles_post_ra>
